<compile_context>
chip_gen: v7x
topology: tpu7x:2x2x1
jax: 0.10.0
libtpu: 0.0.40
codegen_flags: <defaults>
</compile_context>

<pallas_src>
import functools

import jax
import jax.numpy as jnp
from jax.experimental import pallas as pl
from jax.experimental.pallas import tpu as pltpu

HIDDEN = 13
LANES = 128


def mlp_kernel(x_ref, w1_ref, b1_ref, w2_ref, b2_ref, o_ref, *, bf16_tanh):
    # x: (TM, 128) f32 batch tile at full (8,128) vreg density.
    # w1/b1/w2: (13,) f32 in SMEM; b2: (1,) f32 in SMEM.
    x = x_ref[...]
    acc = jnp.zeros_like(x)
    # Statically-unrolled loop over the 13 hidden units: full-density VPU FMAs and
    # EUP tanh; scalar SMEM operands broadcast into the VPU for free.
    for j in range(HIDDEN):
        h = x * w1_ref[j] + b1_ref[j]
        if bf16_tanh:
            # bf16 EUP tanh ~2x f32 throughput on v6e/v7x (do NOT enable on v5e).
            a = jnp.tanh(h.astype(jnp.bfloat16)).astype(jnp.float32)
        else:
            a = jnp.tanh(h)
        acc = acc + a * w2_ref[j]
    o_ref[...] = (acc + b2_ref[0]).astype(o_ref.dtype)


def subclass_model_forward(x, w1, b1, w2, b2, *, tile_rows=512, bf16_tanh=False):
    """y = tanh(x @ W1.T + b1) @ W2.T + b2 with PyTorch-convention parameters.

    x: (N, 1)  w1: (13, 1)  b1: (13,)  w2: (1, 13)  b2: (1,)  ->  (N, 1) f32
    """
    n = x.shape[0]
    rows = pl.cdiv(n, LANES)
    n_pad = rows * LANES

    xf = x.reshape(n).astype(jnp.float32)
    if n_pad != n:
        # Only non-lane-aligned N pays this (small) pad + the output slice below;
        # lane-aligned N is a zero-copy reshape.
        xf = jnp.pad(xf, (0, n_pad - n))
    x2d = xf.reshape(rows, LANES)           # free view: row-major contiguous

    # Sublane tile size: biggest comfortable tile, multiple of 8 (or equal to the
    # full dim), and split into >=2 grid steps when there is enough work so the
    # second TensorCore on v7x is not idle.
    if rows <= max(tile_rows, 8):
        tm = rows
        if rows >= 16:
            tm = ((rows + 1) // 2 + 7) // 8 * 8    # ~half the rows, rounded up to 8
    else:
        tm = max(8, (tile_rows // 8) * 8)
    grid = (pl.cdiv(rows, tm),)

    # Parameters as flat scalar vectors, resident in SMEM.
    w1s = w1.reshape(HIDDEN).astype(jnp.float32)
    b1s = b1.reshape(HIDDEN).astype(jnp.float32)
    w2s = w2.reshape(HIDDEN).astype(jnp.float32)
    b2s = b2.reshape(1).astype(jnp.float32)

    cost = pl.CostEstimate(
        flops=52 * n_pad,                    # ~2*13 FMA-equiv per layer per element
        transcendentals=HIDDEN * n_pad,      # 13 tanh per element
        bytes_accessed=8 * n_pad + 4 * (3 * HIDDEN + 1),
    )

    smem = pl.BlockSpec(memory_space=pltpu.MemorySpace.SMEM)
    out2d = pl.pallas_call(
        functools.partial(mlp_kernel, bf16_tanh=bf16_tanh),
        out_shape=jax.ShapeDtypeStruct((rows, LANES), jnp.float32),
        grid=grid,
        in_specs=[
            pl.BlockSpec((tm, LANES), lambda i: (i, 0)),   # x tile, full density
            smem, smem, smem, smem,                        # w1, b1, w2, b2 in SMEM
        ],
        out_specs=pl.BlockSpec((tm, LANES), lambda i: (i, 0)),
        compiler_params=pltpu.CompilerParams(
            dimension_semantics=("parallel",),             # shard batch tiles across TCs
        ),
        cost_estimate=cost,
    )(x2d, w1s, b1s, w2s, b2s)

    out_flat = out2d.reshape(n_pad)
    if n_pad != n:
        out_flat = out_flat[:n]
    return out_flat.reshape(n, 1)


def init_params(key):
    """Deterministic init mirroring nn.Linear's U(-1/sqrt(fan_in), 1/sqrt(fan_in)).

    PyTorch conventions: w1 (13,1), b1 (13,), w2 (1,13), b2 (1,).
    """
    k1, k2, k3, k4 = jax.random.split(key, 4)
    bound1 = 1.0 / jnp.sqrt(1.0)
    w1 = jax.random.uniform(k1, (HIDDEN, 1), jnp.float32, -bound1, bound1)
    b1 = jax.random.uniform(k2, (HIDDEN,), jnp.float32, -bound1, bound1)
    bound2 = 1.0 / jnp.sqrt(float(HIDDEN))
    w2 = jax.random.uniform(k3, (1, HIDDEN), jnp.float32, -bound2, bound2)
    b2 = jax.random.uniform(k4, (1,), jnp.float32, -bound2, bound2)
    return w1, b1, w2, b2


def _reference(x, w1, b1, w2, b2):
    return jnp.tanh(x @ w1.T + b1) @ w2.T + b2


if __name__ == "__main__":
    key = jax.random.PRNGKey(0)
    pkey, k1, k2, k3 = jax.random.split(key, 4)
    w1, b1, w2, b2 = init_params(pkey)

    # Small batch (pads 8 -> 128 lanes, single (1,128) tile).
    x_small = jax.random.normal(k1, (8, 1), jnp.float32)
    out_small = jax.block_until_ready(subclass_model_forward(x_small, w1, b1, w2, b2))
    ref_small = _reference(x_small, w1, b1, w2, b2)
    assert out_small.shape == (8, 1)
    assert jnp.allclose(out_small, ref_small, atol=1e-5), "mismatch vs reference (small)"

    # Lane-aligned batch: zero-copy reshape path, (32,128) slab split into 2 tiles
    # so both v7x TensorCores get work.
    x_aligned = jax.random.normal(k2, (4096, 1), jnp.float32)
    out_aligned = jax.block_until_ready(subclass_model_forward(x_aligned, w1, b1, w2, b2))
    ref_aligned = _reference(x_aligned, w1, b1, w2, b2)
    assert out_aligned.shape == (4096, 1)
    assert jnp.allclose(out_aligned, ref_aligned, atol=1e-5), "mismatch vs reference (aligned)"

    # Non-aligned batch with a small tile to exercise the multi-step grid and the
    # ragged (masked) last block along the sublane dimension.
    x_ragged = jax.random.normal(k3, (4100, 1), jnp.float32)
    out_ragged = jax.block_until_ready(
        subclass_model_forward(x_ragged, w1, b1, w2, b2, tile_rows=8))
    ref_ragged = _reference(x_ragged, w1, b1, w2, b2)
    assert out_ragged.shape == (4100, 1)
    assert jnp.allclose(out_ragged, ref_ragged, atol=1e-5), "mismatch vs reference (ragged)"

    # bf16-tanh EUP lever (intended for v6e/v7x); tolerance loosened by design.
    out_bf16 = jax.block_until_ready(
        subclass_model_forward(x_aligned, w1, b1, w2, b2, bf16_tanh=True))
    assert jnp.allclose(out_bf16, ref_aligned, atol=5e-2), "mismatch vs reference (bf16 tanh)"

    print("KERNEL_OK")
</pallas_src>

<mosaic_0001>
module attributes {stable_mosaic.version = 11 : i64} {
  func.func @mlp_kernel(%arg0: i32, %arg1: memref<1x128xf32, #tpu.memory_space<vmem>>, %arg2: memref<13xf32, #tpu.memory_space<smem>>, %arg3: memref<13xf32, #tpu.memory_space<smem>>, %arg4: memref<13xf32, #tpu.memory_space<smem>>, %arg5: memref<1xf32, #tpu.memory_space<smem>>, %arg6: memref<1x128xf32, #tpu.memory_space<vmem>>) attributes {dimension_semantics = [#tpu.dimension_semantics<parallel>], iteration_bounds = array<i64: 1>, scalar_prefetch = 0 : i64, scratch_operands = 0 : i64, tpu.core_type = #tpu.core_type<tc>, window_params = [{transform_indices = @transform_0, window_bounds = array<i64: 1, 128>}, {transform_indices = @transform_1, window_bounds = array<i64: 13>}, {transform_indices = @transform_2, window_bounds = array<i64: 13>}, {transform_indices = @transform_3, window_bounds = array<i64: 13>}, {transform_indices = @transform_4, window_bounds = array<i64: 1>}, {transform_indices = @transform_5, window_bounds = array<i64: 1, 128>}]} {
    %c0 = arith.constant 0 : index
    %c0_0 = arith.constant 0 : index
    %0 = vector.load %arg1[%c0, %c0_0] : memref<1x128xf32, #tpu.memory_space<vmem>>, vector<1x128xf32>
    %cst = arith.constant 0.000000e+00 : f32
    %1 = vector.broadcast %cst : f32 to vector<1x128xf32>
    %c0_1 = arith.constant 0 : index
    %2 = memref.load %arg2[%c0_1] : memref<13xf32, #tpu.memory_space<smem>>
    %3 = vector.broadcast %2 : f32 to vector<1x128xf32>
    %4 = arith.mulf %0, %3 : vector<1x128xf32>
    %c0_2 = arith.constant 0 : index
    %5 = memref.load %arg3[%c0_2] : memref<13xf32, #tpu.memory_space<smem>>
    %6 = vector.broadcast %5 : f32 to vector<1x128xf32>
    %7 = arith.addf %4, %6 : vector<1x128xf32>
    %8 = math.tanh %7 : vector<1x128xf32>
    %c0_3 = arith.constant 0 : index
    %9 = memref.load %arg4[%c0_3] : memref<13xf32, #tpu.memory_space<smem>>
    %10 = vector.broadcast %9 : f32 to vector<1x128xf32>
    %11 = arith.mulf %8, %10 : vector<1x128xf32>
    %12 = arith.addf %1, %11 : vector<1x128xf32>
    %c1 = arith.constant 1 : index
    %13 = memref.load %arg2[%c1] : memref<13xf32, #tpu.memory_space<smem>>
    %14 = vector.broadcast %13 : f32 to vector<1x128xf32>
    %15 = arith.mulf %0, %14 : vector<1x128xf32>
    %c1_4 = arith.constant 1 : index
    %16 = memref.load %arg3[%c1_4] : memref<13xf32, #tpu.memory_space<smem>>
    %17 = vector.broadcast %16 : f32 to vector<1x128xf32>
    %18 = arith.addf %15, %17 : vector<1x128xf32>
    %19 = math.tanh %18 : vector<1x128xf32>
    %c1_5 = arith.constant 1 : index
    %20 = memref.load %arg4[%c1_5] : memref<13xf32, #tpu.memory_space<smem>>
    %21 = vector.broadcast %20 : f32 to vector<1x128xf32>
    %22 = arith.mulf %19, %21 : vector<1x128xf32>
    %23 = arith.addf %12, %22 : vector<1x128xf32>
    %c2 = arith.constant 2 : index
    %24 = memref.load %arg2[%c2] : memref<13xf32, #tpu.memory_space<smem>>
    %25 = vector.broadcast %24 : f32 to vector<1x128xf32>
    %26 = arith.mulf %0, %25 : vector<1x128xf32>
    %c2_6 = arith.constant 2 : index
    %27 = memref.load %arg3[%c2_6] : memref<13xf32, #tpu.memory_space<smem>>
    %28 = vector.broadcast %27 : f32 to vector<1x128xf32>
    %29 = arith.addf %26, %28 : vector<1x128xf32>
    %30 = math.tanh %29 : vector<1x128xf32>
    %c2_7 = arith.constant 2 : index
    %31 = memref.load %arg4[%c2_7] : memref<13xf32, #tpu.memory_space<smem>>
    %32 = vector.broadcast %31 : f32 to vector<1x128xf32>
    %33 = arith.mulf %30, %32 : vector<1x128xf32>
    %34 = arith.addf %23, %33 : vector<1x128xf32>
    %c3 = arith.constant 3 : index
    %35 = memref.load %arg2[%c3] : memref<13xf32, #tpu.memory_space<smem>>
    %36 = vector.broadcast %35 : f32 to vector<1x128xf32>
    %37 = arith.mulf %0, %36 : vector<1x128xf32>
    %c3_8 = arith.constant 3 : index
    %38 = memref.load %arg3[%c3_8] : memref<13xf32, #tpu.memory_space<smem>>
    %39 = vector.broadcast %38 : f32 to vector<1x128xf32>
    %40 = arith.addf %37, %39 : vector<1x128xf32>
    %41 = math.tanh %40 : vector<1x128xf32>
    %c3_9 = arith.constant 3 : index
    %42 = memref.load %arg4[%c3_9] : memref<13xf32, #tpu.memory_space<smem>>
    %43 = vector.broadcast %42 : f32 to vector<1x128xf32>
    %44 = arith.mulf %41, %43 : vector<1x128xf32>
    %45 = arith.addf %34, %44 : vector<1x128xf32>
    %c4 = arith.constant 4 : index
    %46 = memref.load %arg2[%c4] : memref<13xf32, #tpu.memory_space<smem>>
    %47 = vector.broadcast %46 : f32 to vector<1x128xf32>
    %48 = arith.mulf %0, %47 : vector<1x128xf32>
    %c4_10 = arith.constant 4 : index
    %49 = memref.load %arg3[%c4_10] : memref<13xf32, #tpu.memory_space<smem>>
    %50 = vector.broadcast %49 : f32 to vector<1x128xf32>
    %51 = arith.addf %48, %50 : vector<1x128xf32>
    %52 = math.tanh %51 : vector<1x128xf32>
    %c4_11 = arith.constant 4 : index
    %53 = memref.load %arg4[%c4_11] : memref<13xf32, #tpu.memory_space<smem>>
    %54 = vector.broadcast %53 : f32 to vector<1x128xf32>
    %55 = arith.mulf %52, %54 : vector<1x128xf32>
    %56 = arith.addf %45, %55 : vector<1x128xf32>
    %c5 = arith.constant 5 : index
    %57 = memref.load %arg2[%c5] : memref<13xf32, #tpu.memory_space<smem>>
    %58 = vector.broadcast %57 : f32 to vector<1x128xf32>
    %59 = arith.mulf %0, %58 : vector<1x128xf32>
    %c5_12 = arith.constant 5 : index
    %60 = memref.load %arg3[%c5_12] : memref<13xf32, #tpu.memory_space<smem>>
    %61 = vector.broadcast %60 : f32 to vector<1x128xf32>
    %62 = arith.addf %59, %61 : vector<1x128xf32>
    %63 = math.tanh %62 : vector<1x128xf32>
    %c5_13 = arith.constant 5 : index
    %64 = memref.load %arg4[%c5_13] : memref<13xf32, #tpu.memory_space<smem>>
    %65 = vector.broadcast %64 : f32 to vector<1x128xf32>
    %66 = arith.mulf %63, %65 : vector<1x128xf32>
    %67 = arith.addf %56, %66 : vector<1x128xf32>
    %c6 = arith.constant 6 : index
    %68 = memref.load %arg2[%c6] : memref<13xf32, #tpu.memory_space<smem>>
    %69 = vector.broadcast %68 : f32 to vector<1x128xf32>
    %70 = arith.mulf %0, %69 : vector<1x128xf32>
    %c6_14 = arith.constant 6 : index
    %71 = memref.load %arg3[%c6_14] : memref<13xf32, #tpu.memory_space<smem>>
    %72 = vector.broadcast %71 : f32 to vector<1x128xf32>
    %73 = arith.addf %70, %72 : vector<1x128xf32>
    %74 = math.tanh %73 : vector<1x128xf32>
    %c6_15 = arith.constant 6 : index
    %75 = memref.load %arg4[%c6_15] : memref<13xf32, #tpu.memory_space<smem>>
    %76 = vector.broadcast %75 : f32 to vector<1x128xf32>
    %77 = arith.mulf %74, %76 : vector<1x128xf32>
    %78 = arith.addf %67, %77 : vector<1x128xf32>
    %c7 = arith.constant 7 : index
    %79 = memref.load %arg2[%c7] : memref<13xf32, #tpu.memory_space<smem>>
    %80 = vector.broadcast %79 : f32 to vector<1x128xf32>
    %81 = arith.mulf %0, %80 : vector<1x128xf32>
    %c7_16 = arith.constant 7 : index
    %82 = memref.load %arg3[%c7_16] : memref<13xf32, #tpu.memory_space<smem>>
    %83 = vector.broadcast %82 : f32 to vector<1x128xf32>
    %84 = arith.addf %81, %83 : vector<1x128xf32>
    %85 = math.tanh %84 : vector<1x128xf32>
    %c7_17 = arith.constant 7 : index
    %86 = memref.load %arg4[%c7_17] : memref<13xf32, #tpu.memory_space<smem>>
    %87 = vector.broadcast %86 : f32 to vector<1x128xf32>
    %88 = arith.mulf %85, %87 : vector<1x128xf32>
    %89 = arith.addf %78, %88 : vector<1x128xf32>
    %c8 = arith.constant 8 : index
    %90 = memref.load %arg2[%c8] : memref<13xf32, #tpu.memory_space<smem>>
    %91 = vector.broadcast %90 : f32 to vector<1x128xf32>
    %92 = arith.mulf %0, %91 : vector<1x128xf32>
    %c8_18 = arith.constant 8 : index
    %93 = memref.load %arg3[%c8_18] : memref<13xf32, #tpu.memory_space<smem>>
    %94 = vector.broadcast %93 : f32 to vector<1x128xf32>
    %95 = arith.addf %92, %94 : vector<1x128xf32>
    %96 = math.tanh %95 : vector<1x128xf32>
    %c8_19 = arith.constant 8 : index
    %97 = memref.load %arg4[%c8_19] : memref<13xf32, #tpu.memory_space<smem>>
    %98 = vector.broadcast %97 : f32 to vector<1x128xf32>
    %99 = arith.mulf %96, %98 : vector<1x128xf32>
    %100 = arith.addf %89, %99 : vector<1x128xf32>
    %c9 = arith.constant 9 : index
    %101 = memref.load %arg2[%c9] : memref<13xf32, #tpu.memory_space<smem>>
    %102 = vector.broadcast %101 : f32 to vector<1x128xf32>
    %103 = arith.mulf %0, %102 : vector<1x128xf32>
    %c9_20 = arith.constant 9 : index
    %104 = memref.load %arg3[%c9_20] : memref<13xf32, #tpu.memory_space<smem>>
    %105 = vector.broadcast %104 : f32 to vector<1x128xf32>
    %106 = arith.addf %103, %105 : vector<1x128xf32>
    %107 = math.tanh %106 : vector<1x128xf32>
    %c9_21 = arith.constant 9 : index
    %108 = memref.load %arg4[%c9_21] : memref<13xf32, #tpu.memory_space<smem>>
    %109 = vector.broadcast %108 : f32 to vector<1x128xf32>
    %110 = arith.mulf %107, %109 : vector<1x128xf32>
    %111 = arith.addf %100, %110 : vector<1x128xf32>
    %c10 = arith.constant 10 : index
    %112 = memref.load %arg2[%c10] : memref<13xf32, #tpu.memory_space<smem>>
    %113 = vector.broadcast %112 : f32 to vector<1x128xf32>
    %114 = arith.mulf %0, %113 : vector<1x128xf32>
    %c10_22 = arith.constant 10 : index
    %115 = memref.load %arg3[%c10_22] : memref<13xf32, #tpu.memory_space<smem>>
    %116 = vector.broadcast %115 : f32 to vector<1x128xf32>
    %117 = arith.addf %114, %116 : vector<1x128xf32>
    %118 = math.tanh %117 : vector<1x128xf32>
    %c10_23 = arith.constant 10 : index
    %119 = memref.load %arg4[%c10_23] : memref<13xf32, #tpu.memory_space<smem>>
    %120 = vector.broadcast %119 : f32 to vector<1x128xf32>
    %121 = arith.mulf %118, %120 : vector<1x128xf32>
    %122 = arith.addf %111, %121 : vector<1x128xf32>
    %c11 = arith.constant 11 : index
    %123 = memref.load %arg2[%c11] : memref<13xf32, #tpu.memory_space<smem>>
    %124 = vector.broadcast %123 : f32 to vector<1x128xf32>
    %125 = arith.mulf %0, %124 : vector<1x128xf32>
    %c11_24 = arith.constant 11 : index
    %126 = memref.load %arg3[%c11_24] : memref<13xf32, #tpu.memory_space<smem>>
    %127 = vector.broadcast %126 : f32 to vector<1x128xf32>
    %128 = arith.addf %125, %127 : vector<1x128xf32>
    %129 = math.tanh %128 : vector<1x128xf32>
    %c11_25 = arith.constant 11 : index
    %130 = memref.load %arg4[%c11_25] : memref<13xf32, #tpu.memory_space<smem>>
    %131 = vector.broadcast %130 : f32 to vector<1x128xf32>
    %132 = arith.mulf %129, %131 : vector<1x128xf32>
    %133 = arith.addf %122, %132 : vector<1x128xf32>
    %c12 = arith.constant 12 : index
    %134 = memref.load %arg2[%c12] : memref<13xf32, #tpu.memory_space<smem>>
    %135 = vector.broadcast %134 : f32 to vector<1x128xf32>
    %136 = arith.mulf %0, %135 : vector<1x128xf32>
    %c12_26 = arith.constant 12 : index
    %137 = memref.load %arg3[%c12_26] : memref<13xf32, #tpu.memory_space<smem>>
    %138 = vector.broadcast %137 : f32 to vector<1x128xf32>
    %139 = arith.addf %136, %138 : vector<1x128xf32>
    %140 = math.tanh %139 : vector<1x128xf32>
    %c12_27 = arith.constant 12 : index
    %141 = memref.load %arg4[%c12_27] : memref<13xf32, #tpu.memory_space<smem>>
    %142 = vector.broadcast %141 : f32 to vector<1x128xf32>
    %143 = arith.mulf %140, %142 : vector<1x128xf32>
    %144 = arith.addf %133, %143 : vector<1x128xf32>
    %c0_28 = arith.constant 0 : index
    %145 = memref.load %arg5[%c0_28] : memref<1xf32, #tpu.memory_space<smem>>
    %146 = vector.broadcast %145 : f32 to vector<1x128xf32>
    %147 = arith.addf %144, %146 : vector<1x128xf32>
    %c0_29 = arith.constant 0 : index
    %c0_30 = arith.constant 0 : index
    %148 = vector.load %arg6[%c0_29, %c0_30] : memref<1x128xf32, #tpu.memory_space<vmem>>, vector<1x128xf32>
    tpu.vector_store %arg6[%c0_29, %c0_30], %147 {strides = array<i32>} : memref<1x128xf32, #tpu.memory_space<vmem>>, vector<1x128xf32>,
    return
  }
  func.func @transform_0(%arg0: i32) -> (i32, i32) {
    %c0_i32 = arith.constant 0 : i32
    %c0_i32_0 = arith.constant 0 : i32
    return %arg0, %c0_i32 : i32, i32
  }
  func.func @transform_1(%arg0: i32) -> i32 {
    %c0_i32 = arith.constant 0 : i32
    %c0_i32_0 = arith.constant 0 : i32
    return %c0_i32 : i32
  }
  func.func @transform_2(%arg0: i32) -> i32 {
    %c0_i32 = arith.constant 0 : i32
    %c0_i32_0 = arith.constant 0 : i32
    return %c0_i32 : i32
  }
  func.func @transform_3(%arg0: i32) -> i32 {
    %c0_i32 = arith.constant 0 : i32
    %c0_i32_0 = arith.constant 0 : i32
    return %c0_i32 : i32
  }
  func.func @transform_4(%arg0: i32) -> i32 {
    %c0_i32 = arith.constant 0 : i32
    %c0_i32_0 = arith.constant 0 : i32
    return %c0_i32 : i32
  }
  func.func @transform_5(%arg0: i32) -> (i32, i32) {
    %c0_i32 = arith.constant 0 : i32
    %c0_i32_0 = arith.constant 0 : i32
    return %arg0, %c0_i32 : i32, i32
  }
}

</mosaic_0001>

<bundles_post_ra>
// kernel: tpu_custom_call.1
= control target key start
LH: loop header
LB: loop body
LE: loop exit
PB: predicated region body
PF: predicated region fallthrough
CT: control target
= control target key end

     0   :  { %11 = vsyncpa [#allocation5], 0  ;;  %s518_s0 = inlined_call_operand.vmem [shape: f32[1,128], index: 0, kind: input, shape index: {}]   ;;  %s519_s1 = inlined_call_operand.vmem [shape: f32[13], index: 1, kind: input, shape index: {}]   ;;  %s520_s2 = inlined_call_operand.vmem [shape: f32[13], index: 2, kind: input, shape index: {}]   ;;  %s521_s3 = inlined_call_operand.vmem [shape: f32[13], index: 3, kind: input, shape index: {}]   ;;  %s522_s4 = inlined_call_operand.<no memory space> [shape: f32[1], index: 4, kind: input, shape index: {}]   ;;  %s523_s5 = inlined_call_operand.hbm [shape: f32[1,128], index: 5, kind: output, shape index: {}]  }
   0x1   :  { %12 = vsyncpa [#allocation7], 0  ;;  %s32_s20 = sshll.u32 %s520_s2, 4  ;;  %s33_s20 = int_to_ptr.vmem [resolvable:$true] %s32_s20 }
   0x2   :  { %13 = vsyncpa [#allocation4], 0  ;;  %s22_s23 = sshll.u32 %s519_s1, 4  ;;  %s288_s24 = scalar_lea.vmem %s33_s20, 16  ;;  %s23_s23 = int_to_ptr.vmem [resolvable:$true] %s22_s23 }
   0x3   :  { %p289_p0 = scmp.ne.s32.totalorder %s33_s20, %s288_s24  ;;  %p293_p1 = scmp.lt.s32.totalorder %s33_s20, %s33_s20 }
   0x4   :  { %p294_p2 = scmp.lt.s32.totalorder %s288_s24, %s288_s24 }
   0x6   :  { %p295_p3 = por %p294_p2, %p293_p1 }
   0x8   :  { %p296_p4 = pnand %p295_p3, %p289_p0 }
   0xa   :  { %299 = shalt.err (!%p296_p4)
}
   0xb   :  { %s352_s25 = smov [#allocation6]   ;;  %s300_s26 = scalar_lea.vmem %s23_s23, 16 }
   0xc   :  { %35 = dma.vmem_to_smem %s33_s20, 16, %s352_s25, [#allocation7]  }
   0xd   :  { %p301_p5 = scmp.ne.s32.totalorder %s23_s23, %s300_s26  ;;  %p305_p6 = scmp.lt.s32.totalorder %s23_s23, %s23_s23 }
   0xe   :  { %p306_p7 = scmp.lt.s32.totalorder %s300_s26, %s300_s26 }
  0x10   :  { %p307_p8 = por %p306_p7, %p305_p6 }
  0x12   :  { %p308_p9 = pnand %p307_p8, %p301_p5 }
  0x14   :  { %311 = shalt.err (!%p308_p9)
}
  0x15   :  { %s353_s2 = smov [#allocation3]   ;;  %s42_s28 = sshll.u32 %s521_s3, 4  ;;  %s43_s28 = int_to_ptr.vmem [resolvable:$true] %s42_s28 }
  0x16   :  { %25 = dma.vmem_to_smem %s23_s23, 16, %s353_s2, [#allocation5]  }
  0x17   :  { %s312_s29 = scalar_lea.vmem %s43_s28, 16  ;;  %p317_p11 = scmp.lt.s32.totalorder %s43_s28, %s43_s28 }
  0x18   :  { %p313_p10 = scmp.ne.s32.totalorder %s43_s28, %s312_s29  ;;  %p318_p12 = scmp.lt.s32.totalorder %s312_s29, %s312_s29 }
  0x1a   :  { %p319_p13 = por %p318_p12, %p317_p11 }
  0x1c   :  { %p320_p0 = pnand %p319_p13, %p313_p10 }
  0x1e   :  { %323 = shalt.err (!%p320_p0)
}
  0x1f   :  { %s354_s30 = smov [#allocation8]  }
  0x20   :  { %45 = dma.vmem_to_smem %s43_s28, 16, %s354_s30, [#allocation7]  }
  0x21   :  { %346 = dma.done.wait [#allocation5], 16  }
  0x22   :  { %347 = vsyncadd [#allocation5], 4294967280 }
  0x23   :  { %348 = dma.done.wait [#allocation7], 32  }
  0x24   :  { %349 = vsyncadd [#allocation7], 4294967264 }
  0x25   :  { %57 = sfence }
  0x26   :  { %s59_s6 = sld [smem:[#allocation3]]  ;;  %s222_s8 = sld [smem:[#allocation3 + $0x1]]  ;;  %v400_v0 = vld [vmem:[%s518_s0] sm:$0x1] }
  0x27   :  { %s62_s7 = sld [smem:[#allocation6]]  ;;  %s223_s9 = sld [smem:[#allocation6 + $0x1]] }
  0x28   :  { %s225_s3 = sld [smem:[#allocation3 + $0x2]]  ;;  %s228_s13 = sld [smem:[#allocation3 + $0x3]] }
  0x29   :  { %s395_s10 = sld [smem:[#allocation6 + $0x2]]  ;;  %s402_s14 = sld [smem:[#allocation6 + $0x3]] }
  0x2a   :  { %s404_s15 = sld [smem:[#allocation3 + $0x4]]  ;;  %s409_s17 = sld [smem:[#allocation8]] }
  0x2b   :  { %s406_s16 = sld [smem:[#allocation6 + $0x4]]  ;;  %s411_s18 = sld [smem:[#allocation3 + $0x5]] }
  0x2c   :  { %v60_v1 = vstv %s59_s6  ;;  %v71_v4 = vstv %s222_s8  ;;  %s414_s0 = sld [smem:[#allocation8 + $0x1]]  ;;  %s416_s19 = sld [smem:[#allocation6 + $0x5]] }
  0x2d   :  { %v63_v2 = vstv %s62_s7  ;;  %v61_v3 = vmul.f32 %v60_v1, %v400_v0  ;;  %v72_v5 = vmul.f32 %v71_v4, %v400_v0  ;;  %v74_v6 = vstv %s223_s9  ;;  %s419_s20 = sld [smem:[#allocation3 + $0x6]]  ;;  %s424_s22 = sld [smem:[#allocation8 + $0x2]] }
  0x2e   :  { %v82_v8 = vstv %s225_s3  ;;  %s421_s21 = sld [smem:[#allocation6 + $0x6]]  ;;  %v93_v12 = vstv %s228_s13  ;;  %s426_s23 = sld [smem:[#allocation3 + $0x7]] }
  0x2f   :  { %v64_v7 = vadd.f32 %v63_v2, %v61_v3  ;;  %v85_v9 = vstv %s395_s10  ;;  %v75_v10 = vadd.f32 %v74_v6, %v72_v5  ;;  %v83_v11 = vmul.f32 %v82_v8, %v400_v0  ;;  %s430_s24 = sld [smem:[#allocation8 + $0x3]]  ;;  %s432_s25 = sld [smem:[#allocation6 + $0x7]] }
  0x30   :  { %v94_v13 = vmul.f32 %v93_v12, %v400_v0  ;;  %v96_v14 = vstv %s402_s14  ;;  %v104_v16 = vstv %s404_s15  ;;  %s436_s26 = sld [smem:[#allocation3 + $0x8]]  ;;  %s442_s1 = sld [smem:[#allocation3 + $0x9]]  ;;  %v67_v26 = vstv %s409_s17 }
  0x31   :  { %262 = vtanh.f32 %v64_v7  ;;  %v86_v15 = vadd.f32 %v85_v9, %v83_v11  ;;  %v107_v17 = vstv %s406_s16  ;;  %s438_s2 = sld [smem:[#allocation6 + $0x8]]  ;;  %v105_v19 = vmul.f32 %v104_v16, %v400_v0  ;;  %s444_s27 = sld [smem:[#allocation8 + $0x4]] }
  0x32   :  { %264 = vtanh.f32 %v75_v10  ;;  %v97_v18 = vadd.f32 %v96_v14, %v94_v13  ;;  %v115_v20 = vstv %s411_s18  ;;  %v118_v22 = vstv %s416_s19  ;;  %s448_s28 = sld [smem:[#allocation6 + $0x9]]  ;;  %s452_s29 = sld [smem:[#allocation3 + $0xa]] }
  0x33   :  { %266 = vtanh.f32 %v86_v15  ;;  %v116_v21 = vmul.f32 %v115_v20, %v400_v0  ;;  %v108_v23 = vadd.f32 %v107_v17, %v105_v19  ;;  %v126_v24 = vstv %s419_s20  ;;  %s454_s30 = sld [smem:[#allocation6 + $0xa]]  ;;  %s457_s6 = sld [smem:[#allocation8 + $0x5]] }
  0x34   :  { %268 = vtanh.f32 %v97_v18  ;;  %v129_v25 = vstv %s421_s21  ;;  %v127_v28 = vmul.f32 %v126_v24, %v400_v0  ;;  %v137_v29 = vstv %s426_s23  ;;  %s461_s7 = sld [smem:[#allocation3 + $0xb]]  ;;  %s470_s9 = sld [smem:[#allocation3 + $0xc]] }
  0x35   :  { %v119_v27 = vadd.f32 %v118_v22, %v116_v21  ;;  %v78_v30 = vstv %s414_s0  ;;  %270 = vtanh.f32 %v108_v23  ;;  %v138_v31 = vmul.f32 %v137_v29, %v400_v0  ;;  %s466_s8 = sld [smem:[#allocation6 + $0xb]]  ;;  %s472_s3 = sld [smem:[#allocation6 + $0xc]] }
  0x36   :  { %v140_v32 = vstv %s432_s25  ;;  %v130_v33 = vadd.f32 %v129_v25, %v127_v28  ;;  %v148_v34 = vstv %s436_s26  ;;  %v89_v36 = vstv %s424_s22  ;;  %s478_s10 = sld [smem:[#allocation8 + $0x6]]  ;;  %s485_s11 = sld [smem:[#allocation8 + $0x7]] }
  0x37   :  { %272 = vtanh.f32 %v119_v27  ;;  %v151_v35 = vstv %s438_s2  ;;  %v141_v37 = vadd.f32 %v140_v32, %v138_v31  ;;  %v149_v38 = vmul.f32 %v148_v34, %v400_v0  ;;  %s491_s12 = sld [smem:[#allocation8 + $0x8]]  ;;  %s496_s13 = sld [smem:[#allocation8 + $0x9]] }
  0x38   :  { %v159_v39 = vstv %s442_s1  ;;  %v100_v40 = vstv %s430_s24  ;;  %274 = vtanh.f32 %v130_v33  ;;  %v162_v42 = vstv %s448_s28  ;;  %s251_s14 = sld [smem:[#allocation8 + $0xa]]  ;;  %s254_s15 = sld [smem:[#allocation8 + $0xb]] }
  0x39   :  { %v160_v41 = vmul.f32 %v159_v39, %v400_v0  ;;  %276 = vtanh.f32 %v141_v37  ;;  %v152_v44 = vadd.f32 %v151_v35, %v149_v38  ;;  %v170_v45 = vstv %s452_s29  ;;  %s257_s16 = sld [smem:[#allocation8 + $0xc]]  ;;  %s355_s0 = smov [#allocation9]  }
  0x3a   :  { %v173_v46 = vstv %s454_s30  ;;  %v111_v49 = vstv %s444_s27  ;;  %v171_v51 = vmul.f32 %v170_v45, %v400_v0  ;;  %v181_v53 = vstv %s461_s7  ;;  %s212_s19 = sshll.u32 %s355_s0, 4  ;;  %s213_s19 = int_to_ptr.vmem [resolvable:$true] %s212_s19 }
  0x3b   :  { %v263_v43 = vpop.eup %262  ;;  %v163_v50 = vadd.f32 %v162_v42, %v160_v41  ;;  %278 = vtanh.f32 %v152_v44  ;;  %v184_v54 = vstv %s466_s8  ;;  %v122_v56 = vstv %s457_s6  ;;  %s324_s20 = scalar_lea.vmem %s213_s19, 16  ;;  %s328_s21 = scalar_lea.vmem %s213_s19, 32 }
  0x3c   :  { %v265_v47 = vpop.eup %264  ;;  %v68_v48 = vmul.f32 %v263_v43, %v67_v26  ;;  %v174_v57 = vadd.f32 %v173_v46, %v171_v51  ;;  %v182_v58 = vmul.f32 %v181_v53, %v400_v0  ;;  %v192_v62 = vstv %s470_s9  ;;  %p325_p1 = scmp.ne.s32.totalorder %s213_s19, %s324_s20  ;;  %p329_p2 = scmp.lt.s32.totalorder %s213_s19, %s213_s19 }
  0x3d   :  { %v79_v52 = vmul.f32 %v265_v47, %v78_v30  ;;  %v267_v55 = vpop.eup %266  ;;  %280 = vtanh.f32 %v163_v50  ;;  %v195_v63 = vstv %s472_s3  ;;  %v193_v3 = vmul.f32 %v192_v62, %v400_v0  ;;  %p330_p3 = scmp.lt.s32.totalorder %s328_s21, %s324_s20 }
  0x3e   :  { %v269_v59 = vpop.eup %268  ;;  %v90_v61 = vmul.f32 %v267_v55, %v89_v36  ;;  %282 = vtanh.f32 %v174_v57  ;;  %v185_v2 = vadd.f32 %v184_v54, %v182_v58  ;;  %v133_v8 = vstv %s478_s10 }
  0x3f   :  { %v80_v60 = vadd.f32 %v79_v52, %v68_v48  ;;  %v101_v1 = vmul.f32 %v269_v59, %v100_v40  ;;  %v271_v4 = vpop.eup %270  ;;  %v196_v9 = vadd.f32 %v195_v63, %v193_v3  ;;  %v144_v13 = vstv %s485_s11  ;;  %p331_p4 = por %p330_p3, %p329_p2 }
  0x40   :  { %v112_v7 = vmul.f32 %v271_v4, %v111_v49  ;;  %284 = vtanh.f32 %v185_v2  ;;  %v155_v0 = vstv %s491_s12  ;;  %v166_v21 = vstv %s496_s13 }
  0x41   :  { %v91_v5 = vadd.f32 %v90_v61, %v80_v60  ;;  %v273_v6 = vpop.eup %272  ;;  %286 = vtanh.f32 %v196_v9  ;;  %v177_v25 = vstv %s251_s14  ;;  %v188_v29 = vstv %s254_s15  ;;  %p332_p5 = pnand %p331_p4, %p325_p1 }
  0x42   :  { %v123_v11 = vmul.f32 %v273_v6, %v122_v56  ;;  %v275_v12 = vpop.eup %274  ;;  %v199_v33 = vstv %s257_s16  ;;  %v203_v39 = vstv %s522_s4 }
  0x43   :  { %v102_v10 = vadd.f32 %v101_v1, %v91_v5  ;;  %v277_v14 = vpop.eup %276  ;;  %v134_v16 = vmul.f32 %v275_v12, %v133_v8 }
  0x44   :  { %v145_v19 = vmul.f32 %v277_v14, %v144_v13 }
  0x45   :  { %v113_v15 = vadd.f32 %v112_v7, %v102_v10  ;;  %v279_v17 = vpop.eup %278 }
  0x46   :  { %v156_v23 = vmul.f32 %v279_v17, %v155_v0 }
  0x47   :  { %v124_v18 = vadd.f32 %v123_v11, %v113_v15  ;;  %v281_v20 = vpop.eup %280 }
  0x48   :  { %v283_v24 = vpop.eup %282  ;;  %v167_v27 = vmul.f32 %v281_v20, %v166_v21 }
  0x49   :  { %v135_v22 = vadd.f32 %v134_v16, %v124_v18  ;;  %v178_v31 = vmul.f32 %v283_v24, %v177_v25 }
  0x4a   :  { %v285_v28 = vpop.eup %284 }
  0x4b   :  { %v146_v26 = vadd.f32 %v145_v19, %v135_v22  ;;  %v287_v32 = vpop.eup %286  ;;  %v189_v35 = vmul.f32 %v285_v28, %v188_v29 }
  0x4c   :  { %v200_v37 = vmul.f32 %v287_v32, %v199_v33 }
  0x4d   :  { %v157_v30 = vadd.f32 %v156_v23, %v146_v26 }
  0x4f   :  { %v168_v34 = vadd.f32 %v167_v27, %v157_v30 }
  0x51   :  { %v179_v36 = vadd.f32 %v178_v31, %v168_v34 }
  0x53   :  { %v190_v38 = vadd.f32 %v189_v35, %v179_v36 }
  0x55   :  { %v201_v40 = vadd.f32 %v200_v37, %v190_v38 }
  0x57   :  { %v204_v41 = vadd.f32 %v203_v39, %v201_v40 }
  0x59   :  { %205 = vst [vmem:[#allocation9] sm:$0x1] %v204_v41 }
  0x5a   :  { %335 = shalt.err (!%p332_p5)
}
  0x5b   :  { %s336_s24 = scalar_lea.hbm %s523_s5, 16 }
  0x5c   :  { %p337_p6 = scmp.ne.s32.totalorder %s523_s5, %s336_s24  ;;  %p340_p7 = scmp.lt.u32.totalorder %s336_s24, %s523_s5 }
  0x5e   :  { %p342_p8 = pnand %p340_p7, %p337_p6 }
  0x60   :  { %345 = shalt.err (!%p342_p8)
}
  0x61   :  { %215 = dma.vmem_to_hbm [thread:$0]  %s213_s19, 16, %s523_s5, [#allocation4]  }
  0x62   :  { %350 = dma.done.wait [#allocation4], 16  }
  0x63   :  { %351 = vsyncadd [#allocation4], 4294967280 }
  0x64   :  { %219 = vsyncpa [#allocation4], 1 }
  0x65   :  { %220 = vsyncpa [#allocation5], 1 }
  0x66   :  { %221 = vsyncpa [#allocation7], 1 }

</bundles_post_ra>
